<compile_context>
chip_gen: v5e
topology: v5e:2x2
jax: 0.10.0
libtpu: 0.0.40
codegen_flags: <defaults>
</compile_context>

<pallas_src>
import jax
import jax.numpy as jnp
from jax import lax
from jax.experimental import pallas as pl
from jax.experimental.pallas import tpu as pltpu


def lstm_tagger_kernel(sent_ref,     # (S, 1)    int32, VMEM (token ids)
                       emb_ref,      # (V, E)    f32
                       w_ih_ref,     # (E, 4H)   f32  (pre-transposed, g-cols *2)
                       w_hh_ref,     # (H, 4H)   f32  (pre-transposed, g-cols *2)
                       b_ref,        # (1, 4H)   f32  (b_ih + b_hh, g-cols *2)
                       w_tag_ref,    # (H, Tpad) f32  (pre-transposed, zero-padded)
                       b_tag_ref,    # (1, Tpad) f32  (pad lanes = -1e30)
                       out_ref,      # (S, Tpad) f32
                       ih_scr,       # (S, 4H)   f32 VMEM scratch (hoisted input proj)
                       h_hist_scr):  # (S, H)    f32 VMEM scratch (per-step hidden)
    S, H = h_hist_scr.shape
    V = emb_ref.shape[0]

    # ---- Embedding gather as ONE one-hot matmul (no scalar-indexed copies,
    #      no OOB reads: an out-of-range id yields an all-zero row). ----
    ids = sent_ref[...]                                            # (S, 1) int32
    onehot = (lax.broadcasted_iota(jnp.int32, (S, V), 1) == ids)   # (S, V) bool
    x = jnp.dot(onehot.astype(jnp.float32), emb_ref[...],
                preferred_element_type=jnp.float32)                # (S, E)

    # ---- Hoisted input projection: one (S,E)@(E,4H) matmul + bias. ----
    ih_scr[...] = (jnp.dot(x, w_ih_ref[...],
                           preferred_element_type=jnp.float32)
                   + b_ref[...])                                   # (S, 4H)

    # ---- Serial recurrence: h/c live in vregs (fori_loop carry). ----
    def step(t, carry):
        h, c = carry                                               # (1,H), (1,H)
        gates = (ih_scr[pl.ds(t, 1), :]
                 + jnp.dot(h, w_hh_ref[...],
                           preferred_element_type=jnp.float32))    # (1, 4H)

        # Single EUP push over the whole gates vreg; tanh recovered on the
        # g-gate lanes via tanh(z) = 2*sigmoid(2z) - 1 (weights pre-scaled).
        act = jax.nn.sigmoid(gates)                                # (1, 4H)
        i_g = act[:, 0 * H:1 * H]
        f_g = act[:, 1 * H:2 * H]
        g_g = 2.0 * act[:, 2 * H:3 * H] - 1.0
        o_g = act[:, 3 * H:4 * H]

        c_new = f_g * c + i_g * g_g
        h_new = o_g * jnp.tanh(c_new)
        h_hist_scr[pl.ds(t, 1), :] = h_new                         # only store/step
        return (h_new, c_new)

    h0 = jnp.zeros((1, H), jnp.float32)
    c0 = jnp.zeros((1, H), jnp.float32)
    lax.fori_loop(0, S, step, (h0, c0), unroll=True)

    # ---- Hoisted hidden2tag + log_softmax; one lane-dense (S, Tpad) store. ----
    logits = (jnp.dot(h_hist_scr[...], w_tag_ref[...],
                      preferred_element_type=jnp.float32)
              + b_tag_ref[...])                                    # pad lanes ~ -1e30
    m = jnp.max(logits, axis=1, keepdims=True)
    lse = jnp.log(jnp.sum(jnp.exp(logits - m), axis=1, keepdims=True)) + m
    out_ref[...] = logits - lse


@jax.jit
def lstm_tagger_forward(sentence, emb, w_ih, w_hh, b_ih, b_hh, w_tag, b_tag):
    """sentence: (S,) int32; emb: (V,E); w_ih: (4H,E); w_hh: (4H,H);
    b_ih,b_hh: (4H,); w_tag: (T,H); b_tag: (T,). Returns (S, T) log-probs."""
    S = sentence.shape[0]
    E = emb.shape[1]
    H = w_hh.shape[1]
    T = w_tag.shape[0]
    TPAD = max(128, pl.cdiv(T, 128) * 128)   # lane-dense output width

    # Pre-transpose weights so the kernel does plain x @ W; scale the g-gate
    # (cell candidate) columns and bias by 2 so one fused sigmoid covers all
    # four gates (tanh(z) = 2*sigmoid(2z) - 1).
    gate_scale = jnp.ones((4 * H,), jnp.float32).at[2 * H:3 * H].set(2.0)
    w_ih_t = jnp.asarray(w_ih.T, jnp.float32) * gate_scale[None, :]       # (E, 4H)
    w_hh_t = jnp.asarray(w_hh.T, jnp.float32) * gate_scale[None, :]       # (H, 4H)
    b = ((b_ih + b_hh).astype(jnp.float32) * gate_scale).reshape(1, 4 * H)

    # Pad the tag head to TPAD lanes: zero weight cols, -1e30 bias so the pad
    # lanes vanish in the softmax (f32 only; keep dtype-aware if switching to bf16).
    w_tag_p = jnp.zeros((H, TPAD), jnp.float32).at[:, :T].set(
        jnp.asarray(w_tag.T, jnp.float32))                                # (H, TPAD)
    b_tag_p = jnp.full((1, TPAD), -1e30, jnp.float32).at[0, :T].set(
        b_tag.astype(jnp.float32))                                        # (1, TPAD)

    sent_ids = sentence.astype(jnp.int32).reshape(S, 1)

    out_padded = pl.pallas_call(
        lstm_tagger_kernel,
        out_shape=jax.ShapeDtypeStruct((S, TPAD), jnp.float32),
        in_specs=[
            pl.BlockSpec(memory_space=pltpu.MemorySpace.VMEM),   # sentence ids (S,1)
            pl.BlockSpec(memory_space=pltpu.MemorySpace.VMEM),   # embedding table
            pl.BlockSpec(memory_space=pltpu.MemorySpace.VMEM),   # W_ih^T (scaled)
            pl.BlockSpec(memory_space=pltpu.MemorySpace.VMEM),   # W_hh^T (scaled)
            pl.BlockSpec(memory_space=pltpu.MemorySpace.VMEM),   # bias (combined, scaled)
            pl.BlockSpec(memory_space=pltpu.MemorySpace.VMEM),   # W_tag^T (padded)
            pl.BlockSpec(memory_space=pltpu.MemorySpace.VMEM),   # b_tag (padded)
        ],
        out_specs=pl.BlockSpec(memory_space=pltpu.MemorySpace.VMEM),
        scratch_shapes=[
            pltpu.VMEM((S, 4 * H), jnp.float32),    # hoisted input projection
            pltpu.VMEM((S, H), jnp.float32),        # hidden-state history
        ],
    )(sent_ids, emb.astype(jnp.float32), w_ih_t, w_hh_t, b, w_tag_p, b_tag_p)

    return out_padded[:, :T]


def reference_forward(sentence, emb, w_ih, w_hh, b_ih, b_hh, w_tag, b_tag):
    """Pure-JAX reference mirroring torch semantics (batch=1)."""
    H = w_hh.shape[1]
    x_seq = emb[sentence]                                   # (S, E)
    h = jnp.zeros((1, H), jnp.float32)
    c = jnp.zeros((1, H), jnp.float32)
    outs = []
    for t in range(x_seq.shape[0]):
        x = x_seq[t:t + 1]
        gates = x @ w_ih.T + h @ w_hh.T + b_ih + b_hh
        i = jax.nn.sigmoid(gates[:, 0 * H:1 * H])
        f = jax.nn.sigmoid(gates[:, 1 * H:2 * H])
        g = jnp.tanh(gates[:, 2 * H:3 * H])
        o = jax.nn.sigmoid(gates[:, 3 * H:4 * H])
        c = f * c + i * g
        h = o * jnp.tanh(c)
        outs.append(h[0])
    lstm_out = jnp.stack(outs)                              # (S, H)
    logits = lstm_out @ w_tag.T + b_tag
    return jax.nn.log_softmax(logits, axis=1)


if __name__ == "__main__":
    # Model sizes (small, consistent with the module's __init__).
    EMBEDDING_DIM = 16
    HIDDEN_DIM = 32
    VOCAB_SIZE = 20
    TAGSET_SIZE = 5
    SEQ_LEN = 8

    key = jax.random.PRNGKey(0)
    ks = jax.random.split(key, 8)
    scale = 1.0 / jnp.sqrt(HIDDEN_DIM)

    emb = jax.random.normal(ks[0], (VOCAB_SIZE, EMBEDDING_DIM), jnp.float32)
    w_ih = jax.random.uniform(ks[1], (4 * HIDDEN_DIM, EMBEDDING_DIM),
                              jnp.float32, -scale, scale)
    w_hh = jax.random.uniform(ks[2], (4 * HIDDEN_DIM, HIDDEN_DIM),
                              jnp.float32, -scale, scale)
    b_ih = jax.random.uniform(ks[3], (4 * HIDDEN_DIM,), jnp.float32, -scale, scale)
    b_hh = jax.random.uniform(ks[4], (4 * HIDDEN_DIM,), jnp.float32, -scale, scale)
    w_tag = jax.random.uniform(ks[5], (TAGSET_SIZE, HIDDEN_DIM),
                               jnp.float32, -scale, scale)
    b_tag = jax.random.uniform(ks[6], (TAGSET_SIZE,), jnp.float32, -scale, scale)

    sentence = jax.random.randint(ks[7], (SEQ_LEN,), 0, VOCAB_SIZE, jnp.int32)

    tag_scores = lstm_tagger_forward(sentence, emb, w_ih, w_hh,
                                     b_ih, b_hh, w_tag, b_tag)
    tag_scores = jax.block_until_ready(tag_scores)

    ref = reference_forward(sentence, emb, w_ih, w_hh, b_ih, b_hh, w_tag, b_tag)
    assert tag_scores.shape == (SEQ_LEN, TAGSET_SIZE)
    # Tolerance allows ~1e-6-level perturbation from the tanh-via-sigmoid fusion.
    assert jnp.allclose(tag_scores, ref, atol=1e-4, rtol=1e-4)

    print("KERNEL_OK")
</pallas_src>

<mosaic_0001>
module attributes {stable_mosaic.version = 11 : i64} {
  func.func @lstm_tagger_kernel(%arg0: memref<8x1xi32, #tpu.memory_space<vmem>>, %arg1: memref<20x16xf32, #tpu.memory_space<vmem>>, %arg2: memref<16x128xf32, #tpu.memory_space<vmem>>, %arg3: memref<32x128xf32, #tpu.memory_space<vmem>>, %arg4: memref<1x128xf32, #tpu.memory_space<vmem>>, %arg5: memref<32x128xf32, #tpu.memory_space<vmem>>, %arg6: memref<1x128xf32, #tpu.memory_space<vmem>>, %arg7: memref<8x128xf32, #tpu.memory_space<vmem>>, %arg8: memref<8x128xf32, #tpu.memory_space<vmem>>, %arg9: memref<8x32xf32, #tpu.memory_space<vmem>>) attributes {dimension_semantics = [], scalar_prefetch = 0 : i64, scratch_operands = 2 : i64, tpu.core_type = #tpu.core_type<tc>} {
    %c0 = arith.constant 0 : index
    %c0_0 = arith.constant 0 : index
    %0 = vector.load %arg0[%c0, %c0_0] : memref<8x1xi32, #tpu.memory_space<vmem>>, vector<8x1xi32>
    %1 = tpu.iota {dimensions = array<i32: 1>} : vector<8x20xi32>
    %2 = vector.broadcast %0 : vector<8x1xi32> to vector<8x20xi32>
    %3 = arith.cmpi eq, %1, %2 : vector<8x20xi32>
    %4 = arith.extui %3 : vector<8x20xi1> to vector<8x20xi32>
    %5 = arith.sitofp %4 : vector<8x20xi32> to vector<8x20xf32>
    %c0_1 = arith.constant 0 : index
    %c0_2 = arith.constant 0 : index
    %6 = vector.load %arg1[%c0_1, %c0_2] : memref<20x16xf32, #tpu.memory_space<vmem>>, vector<20x16xf32>
    %cst = arith.constant dense<0.000000e+00> : vector<8x16xf32>
    %7 = tpu.matmul %5, %6, %cst {dimension_numbers = #tpu.dot_dimension_numbers<[1], [0], [0], [1], [0, 0, 1, 1], [], []>} : vector<8x20xf32>, vector<20x16xf32>, vector<8x16xf32> -> vector<8x16xf32>
    %c0_3 = arith.constant 0 : index
    %c0_4 = arith.constant 0 : index
    %8 = vector.load %arg2[%c0_3, %c0_4] : memref<16x128xf32, #tpu.memory_space<vmem>>, vector<16x128xf32>
    %cst_5 = arith.constant dense<0.000000e+00> : vector<8x128xf32>
    %9 = tpu.matmul %7, %8, %cst_5 {dimension_numbers = #tpu.dot_dimension_numbers<[1], [0], [0], [1], [0, 0, 1, 1], [], []>} : vector<8x16xf32>, vector<16x128xf32>, vector<8x128xf32> -> vector<8x128xf32>
    %c0_6 = arith.constant 0 : index
    %c0_7 = arith.constant 0 : index
    %10 = vector.load %arg4[%c0_6, %c0_7] : memref<1x128xf32, #tpu.memory_space<vmem>>, vector<1x128xf32>
    %11 = vector.broadcast %10 : vector<1x128xf32> to vector<8x128xf32>
    %12 = arith.addf %9, %11 : vector<8x128xf32>
    %c0_8 = arith.constant 0 : index
    %c0_9 = arith.constant 0 : index
    %13 = vector.load %arg8[%c0_8, %c0_9] : memref<8x128xf32, #tpu.memory_space<vmem>>, vector<8x128xf32>
    tpu.vector_store %arg8[%c0_8, %c0_9], %12 {strides = array<i32>} : memref<8x128xf32, #tpu.memory_space<vmem>>, vector<8x128xf32>,
    %cst_10 = arith.constant 0.000000e+00 : f32
    %14 = vector.broadcast %cst_10 : f32 to vector<1x32xf32>
    %cst_11 = arith.constant 0.000000e+00 : f32
    %15 = vector.broadcast %cst_11 : f32 to vector<1x32xf32>
    %c0_i32 = arith.constant 0 : i32
    %16 = arith.index_cast %c0_i32 : i32 to index
    %c0_12 = arith.constant 0 : index
    %17 = vector.load %arg8[%16, %c0_12] : memref<8x128xf32, #tpu.memory_space<vmem>>, vector<1x128xf32>
    %c0_13 = arith.constant 0 : index
    %c0_14 = arith.constant 0 : index
    %18 = vector.load %arg3[%c0_13, %c0_14] : memref<32x128xf32, #tpu.memory_space<vmem>>, vector<32x128xf32>
    %cst_15 = arith.constant dense<0.000000e+00> : vector<1x128xf32>
    %19 = tpu.matmul %14, %18, %cst_15 {dimension_numbers = #tpu.dot_dimension_numbers<[1], [0], [0], [1], [0, 0, 1, 1], [], []>} : vector<1x32xf32>, vector<32x128xf32>, vector<1x128xf32> -> vector<1x128xf32>
    %20 = arith.addf %17, %19 : vector<1x128xf32>
    %21 = arith.negf %20 : vector<1x128xf32>
    %22 = math.exp %21 : vector<1x128xf32>
    %cst_16 = arith.constant 1.000000e+00 : f32
    %23 = vector.broadcast %cst_16 : f32 to vector<1x128xf32>
    %24 = arith.addf %23, %22 : vector<1x128xf32>
    %25 = arith.divf %23, %24 : vector<1x128xf32>
    %26 = vector.extract_strided_slice %25 {offsets = [0, 0], sizes = [1, 32], strides = [1, 1]} : vector<1x128xf32> to vector<1x32xf32>
    %27 = vector.extract_strided_slice %25 {offsets = [0, 32], sizes = [1, 32], strides = [1, 1]} : vector<1x128xf32> to vector<1x32xf32>
    %28 = vector.extract_strided_slice %25 {offsets = [0, 64], sizes = [1, 32], strides = [1, 1]} : vector<1x128xf32> to vector<1x32xf32>
    %cst_17 = arith.constant 2.000000e+00 : f32
    %29 = vector.broadcast %cst_17 : f32 to vector<1x32xf32>
    %30 = arith.mulf %29, %28 : vector<1x32xf32>
    %cst_18 = arith.constant 1.000000e+00 : f32
    %31 = vector.broadcast %cst_18 : f32 to vector<1x32xf32>
    %32 = arith.subf %30, %31 : vector<1x32xf32>
    %33 = vector.extract_strided_slice %25 {offsets = [0, 96], sizes = [1, 32], strides = [1, 1]} : vector<1x128xf32> to vector<1x32xf32>
    %34 = arith.mulf %27, %15 : vector<1x32xf32>
    %35 = arith.mulf %26, %32 : vector<1x32xf32>
    %36 = arith.addf %34, %35 : vector<1x32xf32>
    %37 = math.tanh %36 : vector<1x32xf32>
    %38 = arith.mulf %33, %37 : vector<1x32xf32>
    %39 = arith.index_cast %c0_i32 : i32 to index
    %c0_19 = arith.constant 0 : index
    %40 = vector.load %arg9[%39, %c0_19] : memref<8x32xf32, #tpu.memory_space<vmem>>, vector<1x32xf32>
    tpu.vector_store %arg9[%39, %c0_19], %38 {strides = array<i32>} : memref<8x32xf32, #tpu.memory_space<vmem>>, vector<1x32xf32>,
    %c1_i32 = arith.constant 1 : i32
    %41 = arith.index_cast %c1_i32 : i32 to index
    %c0_20 = arith.constant 0 : index
    %42 = vector.load %arg8[%41, %c0_20] : memref<8x128xf32, #tpu.memory_space<vmem>>, vector<1x128xf32>
    %c0_21 = arith.constant 0 : index
    %c0_22 = arith.constant 0 : index
    %43 = vector.load %arg3[%c0_21, %c0_22] : memref<32x128xf32, #tpu.memory_space<vmem>>, vector<32x128xf32>
    %cst_23 = arith.constant dense<0.000000e+00> : vector<1x128xf32>
    %44 = tpu.matmul %38, %43, %cst_23 {dimension_numbers = #tpu.dot_dimension_numbers<[1], [0], [0], [1], [0, 0, 1, 1], [], []>} : vector<1x32xf32>, vector<32x128xf32>, vector<1x128xf32> -> vector<1x128xf32>
    %45 = arith.addf %42, %44 : vector<1x128xf32>
    %46 = arith.negf %45 : vector<1x128xf32>
    %47 = math.exp %46 : vector<1x128xf32>
    %cst_24 = arith.constant 1.000000e+00 : f32
    %48 = vector.broadcast %cst_24 : f32 to vector<1x128xf32>
    %49 = arith.addf %48, %47 : vector<1x128xf32>
    %50 = arith.divf %48, %49 : vector<1x128xf32>
    %51 = vector.extract_strided_slice %50 {offsets = [0, 0], sizes = [1, 32], strides = [1, 1]} : vector<1x128xf32> to vector<1x32xf32>
    %52 = vector.extract_strided_slice %50 {offsets = [0, 32], sizes = [1, 32], strides = [1, 1]} : vector<1x128xf32> to vector<1x32xf32>
    %53 = vector.extract_strided_slice %50 {offsets = [0, 64], sizes = [1, 32], strides = [1, 1]} : vector<1x128xf32> to vector<1x32xf32>
    %cst_25 = arith.constant 2.000000e+00 : f32
    %54 = vector.broadcast %cst_25 : f32 to vector<1x32xf32>
    %55 = arith.mulf %54, %53 : vector<1x32xf32>
    %cst_26 = arith.constant 1.000000e+00 : f32
    %56 = vector.broadcast %cst_26 : f32 to vector<1x32xf32>
    %57 = arith.subf %55, %56 : vector<1x32xf32>
    %58 = vector.extract_strided_slice %50 {offsets = [0, 96], sizes = [1, 32], strides = [1, 1]} : vector<1x128xf32> to vector<1x32xf32>
    %59 = arith.mulf %52, %36 : vector<1x32xf32>
    %60 = arith.mulf %51, %57 : vector<1x32xf32>
    %61 = arith.addf %59, %60 : vector<1x32xf32>
    %62 = math.tanh %61 : vector<1x32xf32>
    %63 = arith.mulf %58, %62 : vector<1x32xf32>
    %64 = arith.index_cast %c1_i32 : i32 to index
    %c0_27 = arith.constant 0 : index
    %65 = vector.load %arg9[%64, %c0_27] : memref<8x32xf32, #tpu.memory_space<vmem>>, vector<1x32xf32>
    tpu.vector_store %arg9[%64, %c0_27], %63 {strides = array<i32>} : memref<8x32xf32, #tpu.memory_space<vmem>>, vector<1x32xf32>,
    %c2_i32 = arith.constant 2 : i32
    %66 = arith.index_cast %c2_i32 : i32 to index
    %c0_28 = arith.constant 0 : index
    %67 = vector.load %arg8[%66, %c0_28] : memref<8x128xf32, #tpu.memory_space<vmem>>, vector<1x128xf32>
    %c0_29 = arith.constant 0 : index
    %c0_30 = arith.constant 0 : index
    %68 = vector.load %arg3[%c0_29, %c0_30] : memref<32x128xf32, #tpu.memory_space<vmem>>, vector<32x128xf32>
    %cst_31 = arith.constant dense<0.000000e+00> : vector<1x128xf32>
    %69 = tpu.matmul %63, %68, %cst_31 {dimension_numbers = #tpu.dot_dimension_numbers<[1], [0], [0], [1], [0, 0, 1, 1], [], []>} : vector<1x32xf32>, vector<32x128xf32>, vector<1x128xf32> -> vector<1x128xf32>
    %70 = arith.addf %67, %69 : vector<1x128xf32>
    %71 = arith.negf %70 : vector<1x128xf32>
    %72 = math.exp %71 : vector<1x128xf32>
    %cst_32 = arith.constant 1.000000e+00 : f32
    %73 = vector.broadcast %cst_32 : f32 to vector<1x128xf32>
    %74 = arith.addf %73, %72 : vector<1x128xf32>
    %75 = arith.divf %73, %74 : vector<1x128xf32>
    %76 = vector.extract_strided_slice %75 {offsets = [0, 0], sizes = [1, 32], strides = [1, 1]} : vector<1x128xf32> to vector<1x32xf32>
    %77 = vector.extract_strided_slice %75 {offsets = [0, 32], sizes = [1, 32], strides = [1, 1]} : vector<1x128xf32> to vector<1x32xf32>
    %78 = vector.extract_strided_slice %75 {offsets = [0, 64], sizes = [1, 32], strides = [1, 1]} : vector<1x128xf32> to vector<1x32xf32>
    %cst_33 = arith.constant 2.000000e+00 : f32
    %79 = vector.broadcast %cst_33 : f32 to vector<1x32xf32>
    %80 = arith.mulf %79, %78 : vector<1x32xf32>
    %cst_34 = arith.constant 1.000000e+00 : f32
    %81 = vector.broadcast %cst_34 : f32 to vector<1x32xf32>
    %82 = arith.subf %80, %81 : vector<1x32xf32>
    %83 = vector.extract_strided_slice %75 {offsets = [0, 96], sizes = [1, 32], strides = [1, 1]} : vector<1x128xf32> to vector<1x32xf32>
    %84 = arith.mulf %77, %61 : vector<1x32xf32>
    %85 = arith.mulf %76, %82 : vector<1x32xf32>
    %86 = arith.addf %84, %85 : vector<1x32xf32>
    %87 = math.tanh %86 : vector<1x32xf32>
    %88 = arith.mulf %83, %87 : vector<1x32xf32>
    %89 = arith.index_cast %c2_i32 : i32 to index
    %c0_35 = arith.constant 0 : index
    %90 = vector.load %arg9[%89, %c0_35] : memref<8x32xf32, #tpu.memory_space<vmem>>, vector<1x32xf32>
    tpu.vector_store %arg9[%89, %c0_35], %88 {strides = array<i32>} : memref<8x32xf32, #tpu.memory_space<vmem>>, vector<1x32xf32>,
    %c3_i32 = arith.constant 3 : i32
    %91 = arith.index_cast %c3_i32 : i32 to index
    %c0_36 = arith.constant 0 : index
    %92 = vector.load %arg8[%91, %c0_36] : memref<8x128xf32, #tpu.memory_space<vmem>>, vector<1x128xf32>
    %c0_37 = arith.constant 0 : index
    %c0_38 = arith.constant 0 : index
    %93 = vector.load %arg3[%c0_37, %c0_38] : memref<32x128xf32, #tpu.memory_space<vmem>>, vector<32x128xf32>
    %cst_39 = arith.constant dense<0.000000e+00> : vector<1x128xf32>
    %94 = tpu.matmul %88, %93, %cst_39 {dimension_numbers = #tpu.dot_dimension_numbers<[1], [0], [0], [1], [0, 0, 1, 1], [], []>} : vector<1x32xf32>, vector<32x128xf32>, vector<1x128xf32> -> vector<1x128xf32>
    %95 = arith.addf %92, %94 : vector<1x128xf32>
    %96 = arith.negf %95 : vector<1x128xf32>
    %97 = math.exp %96 : vector<1x128xf32>
    %cst_40 = arith.constant 1.000000e+00 : f32
    %98 = vector.broadcast %cst_40 : f32 to vector<1x128xf32>
    %99 = arith.addf %98, %97 : vector<1x128xf32>
    %100 = arith.divf %98, %99 : vector<1x128xf32>
    %101 = vector.extract_strided_slice %100 {offsets = [0, 0], sizes = [1, 32], strides = [1, 1]} : vector<1x128xf32> to vector<1x32xf32>
    %102 = vector.extract_strided_slice %100 {offsets = [0, 32], sizes = [1, 32], strides = [1, 1]} : vector<1x128xf32> to vector<1x32xf32>
    %103 = vector.extract_strided_slice %100 {offsets = [0, 64], sizes = [1, 32], strides = [1, 1]} : vector<1x128xf32> to vector<1x32xf32>
    %cst_41 = arith.constant 2.000000e+00 : f32
    %104 = vector.broadcast %cst_41 : f32 to vector<1x32xf32>
    %105 = arith.mulf %104, %103 : vector<1x32xf32>
    %cst_42 = arith.constant 1.000000e+00 : f32
    %106 = vector.broadcast %cst_42 : f32 to vector<1x32xf32>
    %107 = arith.subf %105, %106 : vector<1x32xf32>
    %108 = vector.extract_strided_slice %100 {offsets = [0, 96], sizes = [1, 32], strides = [1, 1]} : vector<1x128xf32> to vector<1x32xf32>
    %109 = arith.mulf %102, %86 : vector<1x32xf32>
    %110 = arith.mulf %101, %107 : vector<1x32xf32>
    %111 = arith.addf %109, %110 : vector<1x32xf32>
    %112 = math.tanh %111 : vector<1x32xf32>
    %113 = arith.mulf %108, %112 : vector<1x32xf32>
    %114 = arith.index_cast %c3_i32 : i32 to index
    %c0_43 = arith.constant 0 : index
    %115 = vector.load %arg9[%114, %c0_43] : memref<8x32xf32, #tpu.memory_space<vmem>>, vector<1x32xf32>
    tpu.vector_store %arg9[%114, %c0_43], %113 {strides = array<i32>} : memref<8x32xf32, #tpu.memory_space<vmem>>, vector<1x32xf32>,
    %c4_i32 = arith.constant 4 : i32
    %116 = arith.index_cast %c4_i32 : i32 to index
    %c0_44 = arith.constant 0 : index
    %117 = vector.load %arg8[%116, %c0_44] : memref<8x128xf32, #tpu.memory_space<vmem>>, vector<1x128xf32>
    %c0_45 = arith.constant 0 : index
    %c0_46 = arith.constant 0 : index
    %118 = vector.load %arg3[%c0_45, %c0_46] : memref<32x128xf32, #tpu.memory_space<vmem>>, vector<32x128xf32>
    %cst_47 = arith.constant dense<0.000000e+00> : vector<1x128xf32>
    %119 = tpu.matmul %113, %118, %cst_47 {dimension_numbers = #tpu.dot_dimension_numbers<[1], [0], [0], [1], [0, 0, 1, 1], [], []>} : vector<1x32xf32>, vector<32x128xf32>, vector<1x128xf32> -> vector<1x128xf32>
    %120 = arith.addf %117, %119 : vector<1x128xf32>
    %121 = arith.negf %120 : vector<1x128xf32>
    %122 = math.exp %121 : vector<1x128xf32>
    %cst_48 = arith.constant 1.000000e+00 : f32
    %123 = vector.broadcast %cst_48 : f32 to vector<1x128xf32>
    %124 = arith.addf %123, %122 : vector<1x128xf32>
    %125 = arith.divf %123, %124 : vector<1x128xf32>
    %126 = vector.extract_strided_slice %125 {offsets = [0, 0], sizes = [1, 32], strides = [1, 1]} : vector<1x128xf32> to vector<1x32xf32>
    %127 = vector.extract_strided_slice %125 {offsets = [0, 32], sizes = [1, 32], strides = [1, 1]} : vector<1x128xf32> to vector<1x32xf32>
    %128 = vector.extract_strided_slice %125 {offsets = [0, 64], sizes = [1, 32], strides = [1, 1]} : vector<1x128xf32> to vector<1x32xf32>
    %cst_49 = arith.constant 2.000000e+00 : f32
    %129 = vector.broadcast %cst_49 : f32 to vector<1x32xf32>
    %130 = arith.mulf %129, %128 : vector<1x32xf32>
    %cst_50 = arith.constant 1.000000e+00 : f32
    %131 = vector.broadcast %cst_50 : f32 to vector<1x32xf32>
    %132 = arith.subf %130, %131 : vector<1x32xf32>
    %133 = vector.extract_strided_slice %125 {offsets = [0, 96], sizes = [1, 32], strides = [1, 1]} : vector<1x128xf32> to vector<1x32xf32>
    %134 = arith.mulf %127, %111 : vector<1x32xf32>
    %135 = arith.mulf %126, %132 : vector<1x32xf32>
    %136 = arith.addf %134, %135 : vector<1x32xf32>
    %137 = math.tanh %136 : vector<1x32xf32>
    %138 = arith.mulf %133, %137 : vector<1x32xf32>
    %139 = arith.index_cast %c4_i32 : i32 to index
    %c0_51 = arith.constant 0 : index
    %140 = vector.load %arg9[%139, %c0_51] : memref<8x32xf32, #tpu.memory_space<vmem>>, vector<1x32xf32>
    tpu.vector_store %arg9[%139, %c0_51], %138 {strides = array<i32>} : memref<8x32xf32, #tpu.memory_space<vmem>>, vector<1x32xf32>,
    %c5_i32 = arith.constant 5 : i32
    %141 = arith.index_cast %c5_i32 : i32 to index
    %c0_52 = arith.constant 0 : index
    %142 = vector.load %arg8[%141, %c0_52] : memref<8x128xf32, #tpu.memory_space<vmem>>, vector<1x128xf32>
    %c0_53 = arith.constant 0 : index
    %c0_54 = arith.constant 0 : index
    %143 = vector.load %arg3[%c0_53, %c0_54] : memref<32x128xf32, #tpu.memory_space<vmem>>, vector<32x128xf32>
    %cst_55 = arith.constant dense<0.000000e+00> : vector<1x128xf32>
    %144 = tpu.matmul %138, %143, %cst_55 {dimension_numbers = #tpu.dot_dimension_numbers<[1], [0], [0], [1], [0, 0, 1, 1], [], []>} : vector<1x32xf32>, vector<32x128xf32>, vector<1x128xf32> -> vector<1x128xf32>
    %145 = arith.addf %142, %144 : vector<1x128xf32>
    %146 = arith.negf %145 : vector<1x128xf32>
    %147 = math.exp %146 : vector<1x128xf32>
    %cst_56 = arith.constant 1.000000e+00 : f32
    %148 = vector.broadcast %cst_56 : f32 to vector<1x128xf32>
    %149 = arith.addf %148, %147 : vector<1x128xf32>
    %150 = arith.divf %148, %149 : vector<1x128xf32>
    %151 = vector.extract_strided_slice %150 {offsets = [0, 0], sizes = [1, 32], strides = [1, 1]} : vector<1x128xf32> to vector<1x32xf32>
    %152 = vector.extract_strided_slice %150 {offsets = [0, 32], sizes = [1, 32], strides = [1, 1]} : vector<1x128xf32> to vector<1x32xf32>
    %153 = vector.extract_strided_slice %150 {offsets = [0, 64], sizes = [1, 32], strides = [1, 1]} : vector<1x128xf32> to vector<1x32xf32>
    %cst_57 = arith.constant 2.000000e+00 : f32
    %154 = vector.broadcast %cst_57 : f32 to vector<1x32xf32>
    %155 = arith.mulf %154, %153 : vector<1x32xf32>
    %cst_58 = arith.constant 1.000000e+00 : f32
    %156 = vector.broadcast %cst_58 : f32 to vector<1x32xf32>
    %157 = arith.subf %155, %156 : vector<1x32xf32>
    %158 = vector.extract_strided_slice %150 {offsets = [0, 96], sizes = [1, 32], strides = [1, 1]} : vector<1x128xf32> to vector<1x32xf32>
    %159 = arith.mulf %152, %136 : vector<1x32xf32>
    %160 = arith.mulf %151, %157 : vector<1x32xf32>
    %161 = arith.addf %159, %160 : vector<1x32xf32>
    %162 = math.tanh %161 : vector<1x32xf32>
    %163 = arith.mulf %158, %162 : vector<1x32xf32>
    %164 = arith.index_cast %c5_i32 : i32 to index
    %c0_59 = arith.constant 0 : index
    %165 = vector.load %arg9[%164, %c0_59] : memref<8x32xf32, #tpu.memory_space<vmem>>, vector<1x32xf32>
    tpu.vector_store %arg9[%164, %c0_59], %163 {strides = array<i32>} : memref<8x32xf32, #tpu.memory_space<vmem>>, vector<1x32xf32>,
    %c6_i32 = arith.constant 6 : i32
    %166 = arith.index_cast %c6_i32 : i32 to index
    %c0_60 = arith.constant 0 : index
    %167 = vector.load %arg8[%166, %c0_60] : memref<8x128xf32, #tpu.memory_space<vmem>>, vector<1x128xf32>
    %c0_61 = arith.constant 0 : index
    %c0_62 = arith.constant 0 : index
    %168 = vector.load %arg3[%c0_61, %c0_62] : memref<32x128xf32, #tpu.memory_space<vmem>>, vector<32x128xf32>
    %cst_63 = arith.constant dense<0.000000e+00> : vector<1x128xf32>
    %169 = tpu.matmul %163, %168, %cst_63 {dimension_numbers = #tpu.dot_dimension_numbers<[1], [0], [0], [1], [0, 0, 1, 1], [], []>} : vector<1x32xf32>, vector<32x128xf32>, vector<1x128xf32> -> vector<1x128xf32>
    %170 = arith.addf %167, %169 : vector<1x128xf32>
    %171 = arith.negf %170 : vector<1x128xf32>
    %172 = math.exp %171 : vector<1x128xf32>
    %cst_64 = arith.constant 1.000000e+00 : f32
    %173 = vector.broadcast %cst_64 : f32 to vector<1x128xf32>
    %174 = arith.addf %173, %172 : vector<1x128xf32>
    %175 = arith.divf %173, %174 : vector<1x128xf32>
    %176 = vector.extract_strided_slice %175 {offsets = [0, 0], sizes = [1, 32], strides = [1, 1]} : vector<1x128xf32> to vector<1x32xf32>
    %177 = vector.extract_strided_slice %175 {offsets = [0, 32], sizes = [1, 32], strides = [1, 1]} : vector<1x128xf32> to vector<1x32xf32>
    %178 = vector.extract_strided_slice %175 {offsets = [0, 64], sizes = [1, 32], strides = [1, 1]} : vector<1x128xf32> to vector<1x32xf32>
    %cst_65 = arith.constant 2.000000e+00 : f32
    %179 = vector.broadcast %cst_65 : f32 to vector<1x32xf32>
    %180 = arith.mulf %179, %178 : vector<1x32xf32>
    %cst_66 = arith.constant 1.000000e+00 : f32
    %181 = vector.broadcast %cst_66 : f32 to vector<1x32xf32>
    %182 = arith.subf %180, %181 : vector<1x32xf32>
    %183 = vector.extract_strided_slice %175 {offsets = [0, 96], sizes = [1, 32], strides = [1, 1]} : vector<1x128xf32> to vector<1x32xf32>
    %184 = arith.mulf %177, %161 : vector<1x32xf32>
    %185 = arith.mulf %176, %182 : vector<1x32xf32>
    %186 = arith.addf %184, %185 : vector<1x32xf32>
    %187 = math.tanh %186 : vector<1x32xf32>
    %188 = arith.mulf %183, %187 : vector<1x32xf32>
    %189 = arith.index_cast %c6_i32 : i32 to index
    %c0_67 = arith.constant 0 : index
    %190 = vector.load %arg9[%189, %c0_67] : memref<8x32xf32, #tpu.memory_space<vmem>>, vector<1x32xf32>
    tpu.vector_store %arg9[%189, %c0_67], %188 {strides = array<i32>} : memref<8x32xf32, #tpu.memory_space<vmem>>, vector<1x32xf32>,
    %c7_i32 = arith.constant 7 : i32
    %191 = arith.index_cast %c7_i32 : i32 to index
    %c0_68 = arith.constant 0 : index
    %192 = vector.load %arg8[%191, %c0_68] : memref<8x128xf32, #tpu.memory_space<vmem>>, vector<1x128xf32>
    %c0_69 = arith.constant 0 : index
    %c0_70 = arith.constant 0 : index
    %193 = vector.load %arg3[%c0_69, %c0_70] : memref<32x128xf32, #tpu.memory_space<vmem>>, vector<32x128xf32>
    %cst_71 = arith.constant dense<0.000000e+00> : vector<1x128xf32>
    %194 = tpu.matmul %188, %193, %cst_71 {dimension_numbers = #tpu.dot_dimension_numbers<[1], [0], [0], [1], [0, 0, 1, 1], [], []>} : vector<1x32xf32>, vector<32x128xf32>, vector<1x128xf32> -> vector<1x128xf32>
    %195 = arith.addf %192, %194 : vector<1x128xf32>
    %196 = arith.negf %195 : vector<1x128xf32>
    %197 = math.exp %196 : vector<1x128xf32>
    %cst_72 = arith.constant 1.000000e+00 : f32
    %198 = vector.broadcast %cst_72 : f32 to vector<1x128xf32>
    %199 = arith.addf %198, %197 : vector<1x128xf32>
    %200 = arith.divf %198, %199 : vector<1x128xf32>
    %201 = vector.extract_strided_slice %200 {offsets = [0, 0], sizes = [1, 32], strides = [1, 1]} : vector<1x128xf32> to vector<1x32xf32>
    %202 = vector.extract_strided_slice %200 {offsets = [0, 32], sizes = [1, 32], strides = [1, 1]} : vector<1x128xf32> to vector<1x32xf32>
    %203 = vector.extract_strided_slice %200 {offsets = [0, 64], sizes = [1, 32], strides = [1, 1]} : vector<1x128xf32> to vector<1x32xf32>
    %cst_73 = arith.constant 2.000000e+00 : f32
    %204 = vector.broadcast %cst_73 : f32 to vector<1x32xf32>
    %205 = arith.mulf %204, %203 : vector<1x32xf32>
    %cst_74 = arith.constant 1.000000e+00 : f32
    %206 = vector.broadcast %cst_74 : f32 to vector<1x32xf32>
    %207 = arith.subf %205, %206 : vector<1x32xf32>
    %208 = vector.extract_strided_slice %200 {offsets = [0, 96], sizes = [1, 32], strides = [1, 1]} : vector<1x128xf32> to vector<1x32xf32>
    %209 = arith.mulf %202, %186 : vector<1x32xf32>
    %210 = arith.mulf %201, %207 : vector<1x32xf32>
    %211 = arith.addf %209, %210 : vector<1x32xf32>
    %212 = math.tanh %211 : vector<1x32xf32>
    %213 = arith.mulf %208, %212 : vector<1x32xf32>
    %214 = arith.index_cast %c7_i32 : i32 to index
    %c0_75 = arith.constant 0 : index
    %215 = vector.load %arg9[%214, %c0_75] : memref<8x32xf32, #tpu.memory_space<vmem>>, vector<1x32xf32>
    tpu.vector_store %arg9[%214, %c0_75], %213 {strides = array<i32>} : memref<8x32xf32, #tpu.memory_space<vmem>>, vector<1x32xf32>,
    %c8_i32 = arith.constant 8 : i32
    %c0_76 = arith.constant 0 : index
    %c0_77 = arith.constant 0 : index
    %216 = vector.load %arg9[%c0_76, %c0_77] : memref<8x32xf32, #tpu.memory_space<vmem>>, vector<8x32xf32>
    %c0_78 = arith.constant 0 : index
    %c0_79 = arith.constant 0 : index
    %217 = vector.load %arg5[%c0_78, %c0_79] : memref<32x128xf32, #tpu.memory_space<vmem>>, vector<32x128xf32>
    %cst_80 = arith.constant dense<0.000000e+00> : vector<8x128xf32>
    %218 = tpu.matmul %216, %217, %cst_80 {dimension_numbers = #tpu.dot_dimension_numbers<[1], [0], [0], [1], [0, 0, 1, 1], [], []>} : vector<8x32xf32>, vector<32x128xf32>, vector<8x128xf32> -> vector<8x128xf32>
    %c0_81 = arith.constant 0 : index
    %c0_82 = arith.constant 0 : index
    %219 = vector.load %arg6[%c0_81, %c0_82] : memref<1x128xf32, #tpu.memory_space<vmem>>, vector<1x128xf32>
    %220 = vector.broadcast %219 : vector<1x128xf32> to vector<8x128xf32>
    %221 = arith.addf %218, %220 : vector<8x128xf32>
    %cst_83 = arith.constant dense<0xFF800000> : vector<8xf32>
    %222 = vector.multi_reduction <maximumf>, %221, %cst_83 [1] : vector<8x128xf32> to vector<8xf32>
    %223 = vector.shape_cast %222 : vector<8xf32> to vector<8x1xf32>
    %224 = vector.broadcast %223 : vector<8x1xf32> to vector<8x128xf32>
    %225 = arith.subf %221, %224 : vector<8x128xf32>
    %226 = math.exp %225 : vector<8x128xf32>
    %cst_84 = arith.constant dense<0.000000e+00> : vector<8xf32>
    %227 = vector.multi_reduction <add>, %226, %cst_84 [1] : vector<8x128xf32> to vector<8xf32>
    %228 = vector.shape_cast %227 : vector<8xf32> to vector<8x1xf32>
    %229 = math.log %228 : vector<8x1xf32>
    %230 = arith.addf %229, %223 : vector<8x1xf32>
    %231 = vector.broadcast %230 : vector<8x1xf32> to vector<8x128xf32>
    %232 = arith.subf %221, %231 : vector<8x128xf32>
    %c0_85 = arith.constant 0 : index
    %c0_86 = arith.constant 0 : index
    %233 = vector.load %arg7[%c0_85, %c0_86] : memref<8x128xf32, #tpu.memory_space<vmem>>, vector<8x128xf32>
    tpu.vector_store %arg7[%c0_85, %c0_86], %232 {strides = array<i32>} : memref<8x128xf32, #tpu.memory_space<vmem>>, vector<8x128xf32>,
    return
  }
}

</mosaic_0001>

<bundles_post_ra>
// kernel: lstm_tagger_forward.1
= control target key start
LH: loop header
LB: loop body
LE: loop exit
PB: predicated region body
PF: predicated region fallthrough
CT: control target
= control target key end

     0   :  { %vm43_vm0 = vcmask 1043456   ;;  %v843_v3 = vmov 0   ;;  %s987_s0 = inlined_call_operand.vmem [shape: s32[8,1], index: 0, kind: input, shape index: {}]   ;;  %s988_s1 = inlined_call_operand.vmem [shape: f32[20,16], index: 1, kind: input, shape index: {}]   ;;  %s989_s2 = inlined_call_operand.vmem [shape: f32[16,128], index: 2, kind: input, shape index: {}]   ;;  %s990_s3 = inlined_call_operand.vmem [shape: f32[32,128], index: 3, kind: input, shape index: {}]   ;;  %s991_s4 = inlined_call_operand.vmem [shape: f32[1,128], index: 4, kind: input, shape index: {}]   ;;  %s992_s5 = inlined_call_operand.vmem [shape: f32[32,128], index: 5, kind: input, shape index: {}]   ;;  %s993_s6 = inlined_call_operand.vmem [shape: f32[1,128], index: 6, kind: input, shape index: {}]   ;;  %s994_s7 = inlined_call_operand.hbm [shape: f32[8,128], index: 7, kind: output, shape index: {}]  }
   0x1   :  { %v27_v0 = vld [vmem:[%s987_s0] sm:$0xff]  ;;  %v38_v1 = vld [vmem:[%s988_s1 + $0x10] sm:$0xf]  ;;  %v37_v2 = vld [vmem:[%s988_s1 + $0x8] sm:$0xff]  ;;  %762 = vset.pattern.permute.xlu0 %v843_v3 }
   0x2   :  { %730 = vmatpush.msk.msra.mxu0 %vm43_vm0, %v38_v1  ;;  %31 = vperm.xlu0 %762, %v27_v0  }
   0x3   :  { %12 = vsyncpa [#allocation5], 0  ;;  %v36_v4 = vld [vmem:[%s988_s1] sm:$0xff]  ;;  %v68_v5 = vld [vmem:[%s989_s2 + $0x8] sm:$0xff]  ;;  %v28_v7 = vlaneseq  ;;  %vm39_vm1 = vcmask 162816   ;;  %v844_v10 = vmov 0.0  }
   0x4   :  { %61 = vmatpush.msra.mxu0 %v37_v2  ;;  %v102_v6 = vld [vmem:[%s990_s3 + $0x18] sm:$0xff]  ;;  %91 = vmatpush.msra.mxu1 %v68_v5  ;;  %v67_v12 = vld [vmem:[%s989_s2] sm:$0xff]  ;;  %v101_v13 = vld [vmem:[%s990_s3 + $0x10] sm:$0xff]  ;;  %vm73_vm3 = vcmask 130048   ;;  %s846_s19 = smov 32   ;;  %vm170_vm8 = vcmask 253952  }
   0x5   :  { %119 = vmatpush.msra.mxu2 %v102_v6  ;;  %191 = vmatpush.msra.mxu3 %v102_v6  ;;  %v29_v8 = vand.u32 127, %v28_v7  ;;  %v100_v14 = vld [vmem:[%s990_s3 + $0x8] sm:$0xff]  ;;  %v99_v15 = vld [vmem:[%s990_s3] sm:$0xff]  ;;  %vm103_vm9 = vcmask 261120   ;;  %s720_s9 = sshll.u32 %s994_s7, 4  ;;  %s721_s9 = int_to_ptr.hbm [resolvable:$true] %s720_s9 }
   0x6   :  { %62 = vmatpush.msra.mxu0 %v36_v4  ;;  %92 = vmatpush.msra.mxu1 %v67_v12  ;;  %v763_v17 = vld [vmem:[%s991_s4] ss:$0 sm:$0xff]  ;;  %s845_s4 = smov 64  }
   0x7   :  { %120 = vmatpush.msra.mxu2 %v101_v13  ;;  %192 = vmatpush.msra.mxu3 %v101_v13 }
   0x8   :  { %333 = vmatpush.msrb.mxu0 %v102_v6  ;;  %262 = vmatpush.msrb.mxu1 %v102_v6 }
   0x9   :  { %121 = vmatpush.msra.mxu2 %v100_v14  ;;  %193 = vmatpush.msra.mxu3 %v100_v14 }
   0xa   :  { %334 = vmatpush.msrb.mxu0 %v101_v13  ;;  %263 = vmatpush.msrb.mxu1 %v101_v13 }
   0xb   :  { %122 = vmatpush.msra.mxu2 %v99_v15  ;;  %194 = vmatpush.msra.mxu3 %v99_v15 }
   0xc   :  { %335 = vmatpush.msrb.mxu0 %v100_v14  ;;  %123 = vmatmul.f32.vlgmr.msra.gmra.mxu2 %v844_v10 }
   0xd   :  { %264 = vmatpush.msrb.mxu1 %v100_v14  ;;  %404 = vmatpush.msrb.mxu2 %v102_v6 }
   0xe   :  { %336 = vmatpush.msrb.mxu0 %v99_v15  ;;  %475 = vmatpush.msrb.mxu3 %v102_v6 }
   0xf   :  { %265 = vmatpush.msrb.mxu1 %v99_v15  ;;  %405 = vmatpush.msrb.mxu2 %v101_v13 }
  0x10   :  { %476 = vmatpush.msrb.mxu3 %v101_v13 }
  0x11   :  { %406 = vmatpush.msrb.mxu2 %v100_v14 }
  0x12   :  { %477 = vmatpush.msrb.mxu3 %v100_v14 }
  0x13   :  { %407 = vmatpush.msrb.mxu2 %v99_v15 }
  0x14   :  { %478 = vmatpush.msrb.mxu3 %v99_v15 }
  0x74   :  { %v32_v9 = vpop.permute.xlu0 %31 }
  0x75   :  { %vm33_vm2 = vcmp.eq.s32.totalorder %v29_v8, %v32_v9 }
  0x76   :  { %v729_v11 = vsel %vm33_vm2, 1.0, %v844_v10 }
  0x77   :  { %731 = vmatmul.msk.f32.vlgmr.msra.gmra.mxu0 %vm39_vm1, %v729_v11 }
  0x78   :  { %617 = vmatpush.msra.mxu0 %v102_v6 }
  0x7a   :  { %618 = vmatpush.msra.mxu0 %v101_v13 }
  0x7c   :  { %619 = vmatpush.msra.mxu0 %v100_v14 }
  0x7e   :  { %620 = vmatpush.msra.mxu0 %v99_v15 }
  0x8f   :  { %v124_v20 = vpop.f32.mrf.mxu2 }
  0xf4   :  { %v64_v16 = vpop.f32.mrf.mxu0 }
  0xf5   :  { %732 = vmatmul.msk.f32.vlgmr.msra.gmra.mxu1 %vm73_vm3, %v64_v16 }
  0xf6   :  { %546 = vmatpush.msra.mxu1 %v102_v6 }
  0xf8   :  { %547 = vmatpush.msra.mxu1 %v101_v13 }
  0xfa   :  { %548 = vmatpush.msra.mxu1 %v100_v14 }
  0xfc   :  { %549 = vmatpush.msra.mxu1 %v99_v15 }
 0x172   :  { %v94_v18 = vpop.f32.mrf.mxu1 }
 0x173   :  { %v95_v19 = vadd.f32 %v763_v17, %v94_v18 }
 0x175   :  { %97 = vst [vmem:[#allocation2] sm:$0xff] %v95_v19 }
 0x17c   :  { %v98_v21 = vld [vmem:[#allocation2] sm:$0x1]  ;;  %v172_v47 = vld [vmem:[#allocation2 + $0x1] sm:$0x1]  ;;  %v243_v10 = vld [vmem:[#allocation2 + $0x2] sm:$0x1] }
 0x17d   :  { %v127_v22 = vadd.f32 %v124_v20, %v98_v21 }
 0x17f   :  { %v733_v23 = vmul.f32 -1.442695, %v127_v22 }
 0x181   :  { %765 = vpow2.f32 %v733_v23 }
 0x187   :  { %v766_v24 = vpop.eup %765 }
 0x188   :  { %v131_v25 = vadd.f32 1.0, %v766_v24 }
 0x18a   :  { %767 = vrcp.f32 %v131_v25  ;;  %v143_v29 = vand.u32 2147483648, %v131_v25  ;;  %v141_v31 = vand.u32 2147483647, %v131_v25  ;;  %vm137_vm5 = vweird.f32 %v131_v25 }
 0x18c   :  { %v144_v33 = vor.u32 1.1754944e-38, %v143_v29  ;;  %vm142_vm7 = vcmp.eq.f32.partialorder %v141_v31, 8.507059e+37 }
 0x190   :  { %v768_v26 = vpop.eup %767 }
 0x191   :  { %v133_v27 = vmul.f32 %v768_v26, %v131_v25  ;;  %vm138_vm4 = vweird.f32 %v768_v26 }
 0x192   :  { %vm139_vm6 = vmor %vm137_vm5, %vm138_vm4 }
 0x193   :  { %v134_v28 = vsub.f32 1.0, %v133_v27 }
 0x195   :  { %v135_v30 = vmul.f32 %v768_v26, %v134_v28 }
 0x197   :  { %v136_v32 = vadd.f32 %v768_v26, %v135_v30 }
 0x199   :  { %v140_v34 = vsel %vm139_vm6, %v768_v26, %v136_v32 }
 0x19a   :  { %v145_v35 = vsel %vm142_vm7, %v144_v33, %v140_v34 }
 0x19b   :  { %v147_v36 = vmul.f32 2.0, %v145_v35  ;;  %v149_v40 = vmul.f32 0.0, %v145_v35 }
 0x19d   :  { %v734_v37 = vadd.f32 -1.0, %v147_v36 }
 0x19f   :  { %151 = vrot.lane.b32.xlu0 %v734_v37, %s845_s4  ;;  %v314_v37 = vld [vmem:[#allocation2 + $0x3] sm:$0x1] }
 0x211   :  { %v152_v38 = vpop.permute.xlu0 %151 }
 0x212   :  { %v154_v39 = vmul.f32 %v152_v38, %v145_v35 }
 0x214   :  { %156 = vrot.lane.b32.xlu1 %v154_v39, %s846_s19 }
 0x286   :  { %v157_v41 = vpop.permute.xlu1 %156 }
 0x287   :  { %v159_v42 = vadd.f32 %v157_v41, %v149_v40 }
 0x289   :  { %769 = vtanh.f32 %v159_v42 }
 0x28f   :  { %v770_v43 = vpop.eup %769 }
 0x290   :  { %162 = vrot.lane.b32.xlu1 %v770_v43, %s845_s4 }
 0x302   :  { %v163_v44 = vpop.permute.xlu1 %162 }
 0x303   :  { %v165_v45 = vmul.f32 %v163_v44, %v145_v35 }
 0x305   :  { %167 = vrot.lane.b32.xlu2 %v165_v45, %s846_s19 }
 0x35f   :  { %v168_v46 = vpop.permute.xlu2 %167 }
 0x360   :  { %171 = vst.msk [vmem:[#allocation3] sm:$0x1] %vm170_vm8, %v168_v46  ;;  %735 = vmatmul.msk.f32.vlgmr.msra.gmra.mxu3 %vm103_vm9, %v168_v46 }
 0x3e3   :  { %v196_v48 = vpop.f32.mrf.mxu3 }
 0x3e4   :  { %v199_v49 = vadd.f32 %v196_v48, %v172_v47 }
 0x3e6   :  { %v736_v50 = vmul.f32 -1.442695, %v199_v49 }
 0x3e8   :  { %771 = vpow2.f32 %v736_v50 }
 0x3ee   :  { %v772_v51 = vpop.eup %771 }
 0x3ef   :  { %v203_v52 = vadd.f32 1.0, %v772_v51 }
 0x3f1   :  { %773 = vrcp.f32 %v203_v52  ;;  %v215_v56 = vand.u32 2147483648, %v203_v52  ;;  %v213_v58 = vand.u32 2147483647, %v203_v52  ;;  %vm209_vm11 = vweird.f32 %v203_v52 }
 0x3f3   :  { %v216_v60 = vor.u32 1.1754944e-38, %v215_v56  ;;  %vm214_vm13 = vcmp.eq.f32.partialorder %v213_v58, 8.507059e+37 }
 0x3f7   :  { %v774_v53 = vpop.eup %773 }
 0x3f8   :  { %v205_v54 = vmul.f32 %v774_v53, %v203_v52  ;;  %vm210_vm10 = vweird.f32 %v774_v53 }
 0x3f9   :  { %vm211_vm12 = vmor %vm209_vm11, %vm210_vm10 }
 0x3fa   :  { %v206_v55 = vsub.f32 1.0, %v205_v54 }
 0x3fc   :  { %v207_v57 = vmul.f32 %v774_v53, %v206_v55 }
 0x3fe   :  { %v208_v59 = vadd.f32 %v774_v53, %v207_v57 }
 0x400   :  { %v212_v61 = vsel %vm211_vm12, %v774_v53, %v208_v59 }
 0x401   :  { %v217_v62 = vsel %vm214_vm13, %v216_v60, %v212_v61 }
 0x402   :  { %v219_v63 = vmul.f32 2.0, %v217_v62  ;;  %v221_v3 = vmul.f32 %v217_v62, %v159_v42 }
 0x404   :  { %v737_v0 = vadd.f32 -1.0, %v219_v63 }
 0x406   :  { %223 = vrot.lane.b32.xlu2 %v737_v0, %s845_s4  ;;  %v385_v0 = vld [vmem:[#allocation2 + $0x4] sm:$0x1] }
 0x460   :  { %v224_v1 = vpop.permute.xlu2 %223 }
 0x461   :  { %v226_v2 = vmul.f32 %v224_v1, %v217_v62 }
 0x463   :  { %228 = vrot.lane.b32.xlu0 %v226_v2, %s846_s19 }
 0x4d5   :  { %v229_v4 = vpop.permute.xlu0 %228 }
 0x4d6   :  { %v231_v5 = vadd.f32 %v229_v4, %v221_v3 }
 0x4d8   :  { %775 = vtanh.f32 %v231_v5 }
 0x4de   :  { %v776_v6 = vpop.eup %775 }
 0x4df   :  { %234 = vrot.lane.b32.xlu1 %v776_v6, %s845_s4 }
 0x551   :  { %v235_v7 = vpop.permute.xlu1 %234 }
 0x552   :  { %v237_v8 = vmul.f32 %v235_v7, %v217_v62 }
 0x554   :  { %239 = vrot.lane.b32.xlu2 %v237_v8, %s846_s19 }
 0x5ae   :  { %v240_v9 = vpop.permute.xlu2 %239 }
 0x5af   :  { %242 = vst.msk [vmem:[#allocation3 + $0x1] sm:$0x1] %vm170_vm8, %v240_v9  ;;  %738 = vmatmul.msk.f32.vlgmr.msrb.gmra.mxu1 %vm103_vm9, %v240_v9 }
 0x62c   :  { %v267_v11 = vpop.f32.mrf.mxu1 }
 0x62d   :  { %v270_v12 = vadd.f32 %v267_v11, %v243_v10 }
 0x62f   :  { %v739_v13 = vmul.f32 -1.442695, %v270_v12 }
 0x631   :  { %777 = vpow2.f32 %v739_v13 }
 0x637   :  { %v778_v14 = vpop.eup %777 }
 0x638   :  { %v274_v15 = vadd.f32 1.0, %v778_v14 }
 0x63a   :  { %779 = vrcp.f32 %v274_v15  ;;  %v286_v19 = vand.u32 2147483648, %v274_v15  ;;  %v284_v21 = vand.u32 2147483647, %v274_v15  ;;  %vm280_vm15 = vweird.f32 %v274_v15 }
 0x63c   :  { %v287_v23 = vor.u32 1.1754944e-38, %v286_v19  ;;  %vm285_vm1 = vcmp.eq.f32.partialorder %v284_v21, 8.507059e+37 }
 0x640   :  { %v780_v16 = vpop.eup %779 }
 0x641   :  { %v276_v17 = vmul.f32 %v780_v16, %v274_v15  ;;  %vm281_vm14 = vweird.f32 %v780_v16 }
 0x642   :  { %vm282_vm0 = vmor %vm280_vm15, %vm281_vm14 }
 0x643   :  { %v277_v18 = vsub.f32 1.0, %v276_v17 }
 0x645   :  { %v278_v20 = vmul.f32 %v780_v16, %v277_v18 }
 0x647   :  { %v279_v22 = vadd.f32 %v780_v16, %v278_v20 }
 0x649   :  { %v283_v24 = vsel %vm282_vm0, %v780_v16, %v279_v22 }
 0x64a   :  { %v288_v25 = vsel %vm285_vm1, %v287_v23, %v283_v24 }
 0x64b   :  { %v290_v26 = vmul.f32 2.0, %v288_v25  ;;  %v292_v30 = vmul.f32 %v288_v25, %v231_v5 }
 0x64d   :  { %v740_v27 = vadd.f32 -1.0, %v290_v26 }
 0x64f   :  { %294 = vrot.lane.b32.xlu0 %v740_v27, %s845_s4  ;;  %v456_v27 = vld [vmem:[#allocation2 + $0x5] sm:$0x1] }
 0x6c1   :  { %v295_v28 = vpop.permute.xlu0 %294 }
 0x6c2   :  { %v297_v29 = vmul.f32 %v295_v28, %v288_v25 }
 0x6c4   :  { %299 = vrot.lane.b32.xlu1 %v297_v29, %s846_s19 }
 0x736   :  { %v300_v31 = vpop.permute.xlu1 %299 }
 0x737   :  { %v302_v32 = vadd.f32 %v300_v31, %v292_v30 }
 0x739   :  { %781 = vtanh.f32 %v302_v32 }
 0x73f   :  { %v782_v33 = vpop.eup %781 }
 0x740   :  { %305 = vrot.lane.b32.xlu2 %v782_v33, %s845_s4 }
 0x79a   :  { %v306_v34 = vpop.permute.xlu2 %305 }
 0x79b   :  { %v308_v35 = vmul.f32 %v306_v34, %v288_v25 }
 0x79d   :  { %310 = vrot.lane.b32.xlu0 %v308_v35, %s846_s19 }
 0x80f   :  { %v311_v36 = vpop.permute.xlu0 %310 }
 0x810   :  { %313 = vst.msk [vmem:[#allocation3 + $0x2] sm:$0x1] %vm170_vm8, %v311_v36  ;;  %741 = vmatmul.msk.f32.vlgmr.msrb.gmra.mxu0 %vm103_vm9, %v311_v36 }
 0x88d   :  { %v338_v38 = vpop.f32.mrf.mxu0 }
 0x88e   :  { %v341_v39 = vadd.f32 %v338_v38, %v314_v37 }
 0x890   :  { %v742_v40 = vmul.f32 -1.442695, %v341_v39 }
 0x892   :  { %783 = vpow2.f32 %v742_v40 }
 0x898   :  { %v784_v41 = vpop.eup %783 }
 0x899   :  { %v345_v42 = vadd.f32 1.0, %v784_v41 }
 0x89b   :  { %785 = vrcp.f32 %v345_v42  ;;  %v357_v46 = vand.u32 2147483648, %v345_v42  ;;  %v355_v48 = vand.u32 2147483647, %v345_v42  ;;  %vm351_vm3 = vweird.f32 %v345_v42 }
 0x89d   :  { %v358_v50 = vor.u32 1.1754944e-38, %v357_v46  ;;  %vm356_vm5 = vcmp.eq.f32.partialorder %v355_v48, 8.507059e+37 }
 0x8a1   :  { %v786_v43 = vpop.eup %785 }
 0x8a2   :  { %v347_v44 = vmul.f32 %v786_v43, %v345_v42  ;;  %vm352_vm2 = vweird.f32 %v786_v43 }
 0x8a3   :  { %vm353_vm4 = vmor %vm351_vm3, %vm352_vm2 }
 0x8a4   :  { %v348_v45 = vsub.f32 1.0, %v347_v44 }
 0x8a6   :  { %v349_v47 = vmul.f32 %v786_v43, %v348_v45 }
 0x8a8   :  { %v350_v49 = vadd.f32 %v786_v43, %v349_v47 }
 0x8aa   :  { %v354_v51 = vsel %vm353_vm4, %v786_v43, %v350_v49 }
 0x8ab   :  { %v359_v52 = vsel %vm356_vm5, %v358_v50, %v354_v51 }
 0x8ac   :  { %v361_v53 = vmul.f32 2.0, %v359_v52  ;;  %v363_v57 = vmul.f32 %v359_v52, %v302_v32 }
 0x8ae   :  { %v743_v54 = vadd.f32 -1.0, %v361_v53 }
 0x8b0   :  { %365 = vrot.lane.b32.xlu1 %v743_v54, %s845_s4  ;;  %v527_v54 = vld [vmem:[#allocation2 + $0x6] sm:$0x1] }
 0x922   :  { %v366_v55 = vpop.permute.xlu1 %365 }
 0x923   :  { %v368_v56 = vmul.f32 %v366_v55, %v359_v52 }
 0x925   :  { %370 = vrot.lane.b32.xlu2 %v368_v56, %s846_s19 }
 0x97f   :  { %v371_v58 = vpop.permute.xlu2 %370 }
 0x980   :  { %v373_v59 = vadd.f32 %v371_v58, %v363_v57 }
 0x982   :  { %787 = vtanh.f32 %v373_v59 }
 0x988   :  { %v788_v60 = vpop.eup %787 }
 0x989   :  { %376 = vrot.lane.b32.xlu0 %v788_v60, %s845_s4 }
 0x9fb   :  { %v377_v61 = vpop.permute.xlu0 %376 }
 0x9fc   :  { %v379_v62 = vmul.f32 %v377_v61, %v359_v52 }
 0x9fe   :  { %381 = vrot.lane.b32.xlu1 %v379_v62, %s846_s19 }
 0xa70   :  { %v382_v63 = vpop.permute.xlu1 %381 }
 0xa71   :  { %384 = vst.msk [vmem:[#allocation3 + $0x3] sm:$0x1] %vm170_vm8, %v382_v63  ;;  %744 = vmatmul.msk.f32.vlgmr.msrb.gmra.mxu2 %vm103_vm9, %v382_v63 }
 0xaf4   :  { %v409_v1 = vpop.f32.mrf.mxu2 }
 0xaf5   :  { %v412_v2 = vadd.f32 %v409_v1, %v385_v0 }
 0xaf7   :  { %v745_v3 = vmul.f32 -1.442695, %v412_v2 }
 0xaf9   :  { %789 = vpow2.f32 %v745_v3 }
 0xaff   :  { %v790_v4 = vpop.eup %789 }
 0xb00   :  { %v416_v5 = vadd.f32 1.0, %v790_v4 }
 0xb02   :  { %791 = vrcp.f32 %v416_v5  ;;  %v428_v9 = vand.u32 2147483648, %v416_v5  ;;  %v426_v11 = vand.u32 2147483647, %v416_v5  ;;  %vm422_vm7 = vweird.f32 %v416_v5 }
 0xb04   :  { %v429_v13 = vor.u32 1.1754944e-38, %v428_v9  ;;  %vm427_vm11 = vcmp.eq.f32.partialorder %v426_v11, 8.507059e+37 }
 0xb08   :  { %v792_v6 = vpop.eup %791 }
 0xb09   :  { %v418_v7 = vmul.f32 %v792_v6, %v416_v5  ;;  %vm423_vm6 = vweird.f32 %v792_v6 }
 0xb0a   :  { %vm424_vm10 = vmor %vm422_vm7, %vm423_vm6 }
 0xb0b   :  { %v419_v8 = vsub.f32 1.0, %v418_v7 }
 0xb0d   :  { %v420_v10 = vmul.f32 %v792_v6, %v419_v8 }
 0xb0f   :  { %v421_v12 = vadd.f32 %v792_v6, %v420_v10 }
 0xb11   :  { %v425_v14 = vsel %vm424_vm10, %v792_v6, %v421_v12 }
 0xb12   :  { %v430_v15 = vsel %vm427_vm11, %v429_v13, %v425_v14 }
 0xb13   :  { %v432_v16 = vmul.f32 2.0, %v430_v15  ;;  %v434_v20 = vmul.f32 %v430_v15, %v373_v59 }
 0xb15   :  { %v746_v17 = vadd.f32 -1.0, %v432_v16 }
 0xb17   :  { %436 = vrot.lane.b32.xlu2 %v746_v17, %s845_s4  ;;  %v598_v17 = vld [vmem:[#allocation2 + $0x7] sm:$0x1] }
 0xb71   :  { %v437_v18 = vpop.permute.xlu2 %436 }
 0xb72   :  { %v439_v19 = vmul.f32 %v437_v18, %v430_v15 }
 0xb74   :  { %441 = vrot.lane.b32.xlu0 %v439_v19, %s846_s19 }
 0xbe6   :  { %v442_v21 = vpop.permute.xlu0 %441 }
 0xbe7   :  { %v444_v22 = vadd.f32 %v442_v21, %v434_v20 }
 0xbe9   :  { %793 = vtanh.f32 %v444_v22 }
 0xbef   :  { %v794_v23 = vpop.eup %793 }
 0xbf0   :  { %447 = vrot.lane.b32.xlu1 %v794_v23, %s845_s4 }
 0xc62   :  { %v448_v24 = vpop.permute.xlu1 %447 }
 0xc63   :  { %v450_v25 = vmul.f32 %v448_v24, %v430_v15 }
 0xc65   :  { %452 = vrot.lane.b32.xlu2 %v450_v25, %s846_s19 }
 0xcbf   :  { %v453_v26 = vpop.permute.xlu2 %452 }
 0xcc0   :  { %455 = vst.msk [vmem:[#allocation3 + $0x4] sm:$0x1] %vm170_vm8, %v453_v26  ;;  %747 = vmatmul.msk.f32.vlgmr.msrb.gmra.mxu3 %vm103_vm9, %v453_v26 }
 0xd43   :  { %v480_v28 = vpop.f32.mrf.mxu3 }
 0xd44   :  { %v483_v29 = vadd.f32 %v480_v28, %v456_v27 }
 0xd46   :  { %v748_v30 = vmul.f32 -1.442695, %v483_v29 }
 0xd48   :  { %795 = vpow2.f32 %v748_v30 }
 0xd4e   :  { %v796_v31 = vpop.eup %795 }
 0xd4f   :  { %v487_v32 = vadd.f32 1.0, %v796_v31 }
 0xd51   :  { %797 = vrcp.f32 %v487_v32  ;;  %v499_v36 = vand.u32 2147483648, %v487_v32  ;;  %v497_v38 = vand.u32 2147483647, %v487_v32  ;;  %vm493_vm13 = vweird.f32 %v487_v32 }
 0xd53   :  { %v500_v40 = vor.u32 1.1754944e-38, %v499_v36  ;;  %vm498_vm15 = vcmp.eq.f32.partialorder %v497_v38, 8.507059e+37 }
 0xd57   :  { %v798_v33 = vpop.eup %797 }
 0xd58   :  { %v489_v34 = vmul.f32 %v798_v33, %v487_v32  ;;  %vm494_vm12 = vweird.f32 %v798_v33 }
 0xd59   :  { %vm495_vm14 = vmor %vm493_vm13, %vm494_vm12 }
 0xd5a   :  { %v490_v35 = vsub.f32 1.0, %v489_v34 }
 0xd5c   :  { %v491_v37 = vmul.f32 %v798_v33, %v490_v35 }
 0xd5e   :  { %v492_v39 = vadd.f32 %v798_v33, %v491_v37 }
 0xd60   :  { %v496_v41 = vsel %vm495_vm14, %v798_v33, %v492_v39 }
 0xd61   :  { %v501_v42 = vsel %vm498_vm15, %v500_v40, %v496_v41 }
 0xd62   :  { %v503_v43 = vmul.f32 2.0, %v501_v42  ;;  %v505_v47 = vmul.f32 %v501_v42, %v444_v22 }
 0xd64   :  { %v749_v44 = vadd.f32 -1.0, %v503_v43  ;;  %v673_v43 = vld [vmem:[%s992_s5 + $0x18] sm:$0xff] }
 0xd65   :  { %693 = vmatpush.msra.mxu2 %v673_v43 }
 0xd66   :  { %507 = vrot.lane.b32.xlu0 %v749_v44, %s845_s4  ;;  %v672_v44 = vld [vmem:[%s992_s5 + $0x10] sm:$0xff] }
 0xd67   :  { %694 = vmatpush.msra.mxu2 %v672_v44 }
 0xdd8   :  { %v508_v45 = vpop.permute.xlu0 %507 }
 0xdd9   :  { %v510_v46 = vmul.f32 %v508_v45, %v501_v42  ;;  %v671_v45 = vld [vmem:[%s992_s5 + $0x8] sm:$0xff] }
 0xdda   :  { %695 = vmatpush.msra.mxu2 %v671_v45 }
 0xddb   :  { %512 = vrot.lane.b32.xlu1 %v510_v46, %s846_s19  ;;  %v670_v46 = vld [vmem:[%s992_s5] sm:$0xff]  ;;  %s847_s5 = smov [#allocation4]  }
 0xddc   :  { %696 = vmatpush.msra.mxu2 %v670_v46  ;;  %s718_s30 = sshll.u32 %s847_s5, 4  ;;  %s719_s30 = int_to_ptr.vmem [resolvable:$true] %s718_s30 }
 0xe4d   :  { %v513_v48 = vpop.permute.xlu1 %512 }
 0xe4e   :  { %v515_v49 = vadd.f32 %v513_v48, %v505_v47 }
 0xe50   :  { %799 = vtanh.f32 %v515_v49 }
 0xe56   :  { %v800_v50 = vpop.eup %799 }
 0xe57   :  { %518 = vrot.lane.b32.xlu2 %v800_v50, %s845_s4 }
 0xeb1   :  { %v519_v51 = vpop.permute.xlu2 %518 }
 0xeb2   :  { %v521_v52 = vmul.f32 %v519_v51, %v501_v42 }
 0xeb4   :  { %523 = vrot.lane.b32.xlu0 %v521_v52, %s846_s19 }
 0xf26   :  { %v524_v53 = vpop.permute.xlu0 %523 }
 0xf27   :  { %526 = vst.msk [vmem:[#allocation3 + $0x5] sm:$0x1] %vm170_vm8, %v524_v53  ;;  %750 = vmatmul.msk.f32.vlgmr.msra.gmra.mxu1 %vm103_vm9, %v524_v53 }
 0xfa4   :  { %v551_v55 = vpop.f32.mrf.mxu1 }
 0xfa5   :  { %v554_v56 = vadd.f32 %v551_v55, %v527_v54 }
 0xfa7   :  { %v751_v57 = vmul.f32 -1.442695, %v554_v56 }
 0xfa9   :  { %801 = vpow2.f32 %v751_v57 }
 0xfaf   :  { %v802_v58 = vpop.eup %801 }
 0xfb0   :  { %v558_v59 = vadd.f32 1.0, %v802_v58 }
 0xfb2   :  { %803 = vrcp.f32 %v558_v59  ;;  %v570_v63 = vand.u32 2147483648, %v558_v59  ;;  %v568_v1 = vand.u32 2147483647, %v558_v59  ;;  %vm564_vm1 = vweird.f32 %v558_v59 }
 0xfb4   :  { %v571_v3 = vor.u32 1.1754944e-38, %v570_v63  ;;  %vm569_vm3 = vcmp.eq.f32.partialorder %v568_v1, 8.507059e+37 }
 0xfb8   :  { %v804_v60 = vpop.eup %803 }
 0xfb9   :  { %v560_v61 = vmul.f32 %v804_v60, %v558_v59  ;;  %vm565_vm0 = vweird.f32 %v804_v60 }
 0xfba   :  { %vm566_vm2 = vmor %vm564_vm1, %vm565_vm0 }
 0xfbb   :  { %v561_v62 = vsub.f32 1.0, %v560_v61 }
 0xfbd   :  { %v562_v0 = vmul.f32 %v804_v60, %v561_v62 }
 0xfbf   :  { %v563_v2 = vadd.f32 %v804_v60, %v562_v0 }
 0xfc1   :  { %v567_v4 = vsel %vm566_vm2, %v804_v60, %v563_v2 }
 0xfc2   :  { %v572_v5 = vsel %vm569_vm3, %v571_v3, %v567_v4 }
 0xfc3   :  { %v574_v6 = vmul.f32 2.0, %v572_v5  ;;  %v576_v10 = vmul.f32 %v572_v5, %v515_v49  ;;  %v764_v49 = vld [vmem:[%s993_s6] ss:$0 sm:$0xff] }
 0xfc5   :  { %v752_v7 = vadd.f32 -1.0, %v574_v6 }
 0xfc7   :  { %578 = vrot.lane.b32.xlu1 %v752_v7, %s845_s4 }
0x1039   :  { %v579_v8 = vpop.permute.xlu1 %578 }
0x103a   :  { %v581_v9 = vmul.f32 %v579_v8, %v572_v5 }
0x103c   :  { %583 = vrot.lane.b32.xlu2 %v581_v9, %s846_s19 }
0x1096   :  { %v584_v11 = vpop.permute.xlu2 %583 }
0x1097   :  { %v586_v12 = vadd.f32 %v584_v11, %v576_v10 }
0x1099   :  { %805 = vtanh.f32 %v586_v12 }
0x109f   :  { %v806_v13 = vpop.eup %805 }
0x10a0   :  { %589 = vrot.lane.b32.xlu0 %v806_v13, %s845_s4 }
0x1112   :  { %v590_v14 = vpop.permute.xlu0 %589 }
0x1113   :  { %v592_v15 = vmul.f32 %v590_v14, %v572_v5 }
0x1115   :  { %594 = vrot.lane.b32.xlu1 %v592_v15, %s846_s19 }
0x1187   :  { %v595_v16 = vpop.permute.xlu1 %594 }
0x1188   :  { %597 = vst.msk [vmem:[#allocation3 + $0x6] sm:$0x1] %vm170_vm8, %v595_v16  ;;  %753 = vmatmul.msk.f32.vlgmr.msra.gmra.mxu0 %vm103_vm9, %v595_v16 }
0x1205   :  { %v622_v18 = vpop.f32.mrf.mxu0 }
0x1206   :  { %v625_v19 = vadd.f32 %v622_v18, %v598_v17 }
0x1208   :  { %v754_v20 = vmul.f32 -1.442695, %v625_v19 }
0x120a   :  { %807 = vpow2.f32 %v754_v20 }
0x1210   :  { %v808_v21 = vpop.eup %807 }
0x1211   :  { %v629_v22 = vadd.f32 1.0, %v808_v21 }
0x1213   :  { %809 = vrcp.f32 %v629_v22  ;;  %v641_v26 = vand.u32 2147483648, %v629_v22  ;;  %v639_v28 = vand.u32 2147483647, %v629_v22  ;;  %vm635_vm5 = vweird.f32 %v629_v22 }
0x1215   :  { %v642_v30 = vor.u32 1.1754944e-38, %v641_v26  ;;  %vm640_vm7 = vcmp.eq.f32.partialorder %v639_v28, 8.507059e+37 }
0x1219   :  { %v810_v23 = vpop.eup %809 }
0x121a   :  { %v631_v24 = vmul.f32 %v810_v23, %v629_v22  ;;  %vm636_vm4 = vweird.f32 %v810_v23 }
0x121b   :  { %vm637_vm6 = vmor %vm635_vm5, %vm636_vm4 }
0x121c   :  { %v632_v25 = vsub.f32 1.0, %v631_v24 }
0x121e   :  { %v633_v27 = vmul.f32 %v810_v23, %v632_v25 }
0x1220   :  { %v634_v29 = vadd.f32 %v810_v23, %v633_v27 }
0x1222   :  { %v638_v31 = vsel %vm637_vm6, %v810_v23, %v634_v29 }
0x1223   :  { %v643_v32 = vsel %vm640_vm7, %v642_v30, %v638_v31 }
0x1224   :  { %v645_v33 = vmul.f32 2.0, %v643_v32  ;;  %v647_v37 = vmul.f32 %v643_v32, %v586_v12 }
0x1226   :  { %v755_v34 = vadd.f32 -1.0, %v645_v33 }
0x1228   :  { %649 = vrot.lane.b32.xlu2 %v755_v34, %s845_s4 }
0x1282   :  { %v650_v35 = vpop.permute.xlu2 %649 }
0x1283   :  { %v652_v36 = vmul.f32 %v650_v35, %v643_v32 }
0x1285   :  { %654 = vrot.lane.b32.xlu0 %v652_v36, %s846_s19 }
0x12f7   :  { %v655_v38 = vpop.permute.xlu0 %654 }
0x12f8   :  { %v657_v39 = vadd.f32 %v655_v38, %v647_v37 }
0x12fa   :  { %811 = vtanh.f32 %v657_v39 }
0x1300   :  { %v812_v40 = vpop.eup %811 }
0x1301   :  { %660 = vrot.lane.b32.xlu1 %v812_v40, %s845_s4 }
0x1373   :  { %v661_v41 = vpop.permute.xlu1 %660 }
0x1374   :  { %v663_v42 = vmul.f32 %v661_v41, %v643_v32 }
0x1376   :  { %665 = vrot.lane.b32.xlu2 %v663_v42, %s846_s19 }
0x13d0   :  { %v666_v47 = vpop.permute.xlu2 %665 }
0x13d1   :  { %668 = vst.msk [vmem:[#allocation3 + $0x7] sm:$0x1] %vm170_vm8, %v666_v47 }
0x13d8   :  { %v669_v48 = vld [vmem:[#allocation3] sm:$0xff] }
0x13d9   :  { %756 = vmatmul.msk.f32.vlgmr.msra.gmra.mxu2 %vm103_vm9, %v669_v48 }
0x145c   :  { %v698_v50 = vpop.f32.mrf.mxu2 }
0x145d   :  { %v699_v51 = vadd.f32 %v764_v49, %v698_v50 }
0x145f   :  { %701 = vmax.xlane.f32.xlu0 %v699_v51 }
0x14d2   :  { %v702_v52 = vpop.xlane.xlu0 %701 }
0x14d3   :  { %v703_v53 = vsub.f32 %v699_v51, %v702_v52 }
0x14d5   :  { %v704_v54 = vmul.f32 1.442695, %v703_v53 }
0x14d7   :  { %813 = vpow2.f32 %v704_v54 }
0x14dd   :  { %v814_v55 = vpop.eup %813 }
0x14de   :  { %706 = vadd.xlane.f32.xlu1 %v814_v55 }
0x1551   :  { %v707_v56 = vpop.xlane.xlu1 %706 }
0x1552   :  { %815 = vlog2.f32 %v707_v56 }
0x1558   :  { %v816_v57 = vpop.eup %815 }
0x1559   :  { %v709_v58 = vmul.f32 0.6931472, %v816_v57 }
0x155b   :  { %v710_v59 = vadd.f32 %v709_v58, %v702_v52 }
0x155d   :  { %v711_v60 = vsub.f32 %v699_v51, %v710_v59 }
0x155f   :  { %712 = vst [vmem:[#allocation4] sm:$0xff] %v711_v60 }
0x1560   :  { %723 = dma.vmem_to_hbm [thread:$0]  %s719_s30, 128, %s721_s9, [#allocation5]  }
0x1561   :  { %841 = dma.done.wait [#allocation5], 128  }
0x1562   :  { %842 = vsyncadd [#allocation5], 4294967168 }
0x1563   :  { %728 = vsyncpa [#allocation5], 1 }

</bundles_post_ra>
